<compile_context>
chip_gen: v7x
topology: tpu7x:2x2x1
jax: 0.10.0
libtpu: 0.0.40
codegen_flags: <defaults>
</compile_context>

<pallas_src>
import functools

import jax
import jax.numpy as jnp
from jax.experimental import pallas as pl
from jax.experimental.pallas import tpu as pltpu


def _round_up(x, m):
    return (x + m - 1) // m * m


def _vmem_cap_bytes():
    """Per-core VMEM capacity; conservative (v7x-sized) fallback if unknown."""
    try:
        return int(pltpu.get_tpu_info().vmem_capacity_bytes)
    except Exception:
        return 64 * 2**20


# ---------------------------------------------------------------------------
# Kernels
# ---------------------------------------------------------------------------

def _gcn_fused_kernel(mvv_ref, x_ref, wt_ref, b_ref, o_ref, *, compute_dtype):
    """One node tile per grid step; whole contraction (tile_k = N) in one dot.

    mvv_ref: (TM, N)  Mvv row tile, streamed in its HBM storage dtype
    x_ref:   (N, H)   node features (grid-invariant, VMEM resident)
    wt_ref:  (H, H)   W.T (grid-invariant)
    b_ref:   (1, H)   bias, f32 (grid-invariant)
    o_ref:   (TM, H)  output tile
    """
    # Tiny projection, recomputed per node tile (~H/TM of the main matmul,
    # hidden under the Mvv DMA); keeps xW out of HBM entirely.
    xw = jnp.dot(x_ref[...], wt_ref[...],
                 preferred_element_type=jnp.float32).astype(compute_dtype)
    # Cast the streamed Mvv tile in-kernel (no wrapper-level HBM round trip).
    mvv = mvv_ref[...].astype(compute_dtype)
    acc = jnp.dot(mvv, xw, preferred_element_type=jnp.float32)
    o_ref[...] = jnp.maximum(acc + b_ref[...], 0.0).astype(o_ref.dtype)


def _gcn_ktiled_kernel(mvv_ref, x_ref, wt_ref, b_ref, o_ref, acc_ref, *,
                       compute_dtype):
    """Fallback for very large N: contraction tiled along k with f32 acc.

    mvv_ref: (TM, TK), x_ref: (TK, H), wt_ref: (H, H), b_ref: (1, H),
    o_ref: (TM, H), acc_ref: (TM, H) f32 scratch (resident across k).
    """
    k = pl.program_id(1)

    @pl.when(k == 0)
    def _():
        acc_ref[...] = jnp.zeros_like(acc_ref)

    xw = jnp.dot(x_ref[...], wt_ref[...],
                 preferred_element_type=jnp.float32).astype(compute_dtype)
    acc_ref[...] += jnp.dot(mvv_ref[...].astype(compute_dtype), xw,
                            preferred_element_type=jnp.float32)

    @pl.when(k == pl.num_programs(1) - 1)
    def _():
        o_ref[...] = jnp.maximum(acc_ref[...] + b_ref[...],
                                 0.0).astype(o_ref.dtype)


# ---------------------------------------------------------------------------
# VMEM estimates (double-buffered pipelined blocks + intermediates)
# ---------------------------------------------------------------------------

def _fused_vmem_bytes(tile_m, n, h, mvv_b, x_b, out_b):
    return (2 * tile_m * n * mvv_b          # Mvv tile (double-buffered)
            + 2 * n * h * x_b               # x (grid-invariant)
            + 2 * h * h * x_b               # W.T
            + 2 * h * 4                     # bias
            + 2 * tile_m * h * out_b        # output tile
            + n * h * 4 + tile_m * h * 4)   # xw / acc intermediates


def _ktiled_vmem_bytes(tile_m, tile_k, h, mvv_b, x_b, out_b):
    return (2 * tile_m * tile_k * mvv_b
            + 2 * tile_k * h * x_b
            + 2 * h * h * x_b
            + 2 * h * 4
            + 2 * tile_m * h * out_b
            + tile_m * h * 4                # f32 accumulator scratch
            + tile_k * h * 4)               # xw intermediate


# ---------------------------------------------------------------------------
# Wrapper
# ---------------------------------------------------------------------------

def gcn_layer(mvv, x, weight, bias, *, tile_m=None, tile_k=None,
              compute_dtype=jnp.bfloat16, out_dtype=None):
    """relu((Mvv @ x) @ W.T + b), computed as relu(Mvv @ (x @ W.T) + b).

    Mvv is streamed in its storage dtype (store it in bf16 for the full HBM
    bandwidth win); tiles are cast to `compute_dtype` inside the kernel right
    before the MXU dot.  Pass compute_dtype=jnp.float32 for full-f32 matmul
    semantics.  The cast to out_dtype (default: x.dtype) happens only after
    f32 accumulation.
    """
    N, N2 = mvv.shape
    assert N == N2, "Mvv must be square"
    Nx, H = x.shape
    assert Nx == N
    assert weight.shape == (H, H)
    assert bias.shape == (H,)
    out_dtype = x.dtype if out_dtype is None else out_dtype

    mvv_b = jnp.dtype(mvv.dtype).itemsize
    x_b = jnp.dtype(x.dtype).itemsize
    out_b = jnp.dtype(out_dtype).itemsize

    # Generation-aware VMEM budget: ~48 MiB on v7x (64 MiB physical),
    # ~96 MiB on v5e / v6e (128 MiB physical).
    cap = min(int(_vmem_cap_bytes() * 3 // 4), 100 * 2**20)
    budget = int(cap * 0.9)

    # ---- tile selection ---------------------------------------------------
    if N <= 2048:
        n_pad = _round_up(N, 8)
        if tile_m is None:
            # Keep >=2 parallel node blocks when cleanly possible (v7x
            # megacore); cost on 1-TC chips is one extra ~0.35us grid step.
            tile_m = n_pad // 2 if (n_pad >= 16 and n_pad % 16 == 0) else n_pad
        if tile_k is None:
            tile_k = n_pad                   # fused: whole contraction per step
    else:
        n_pad = _round_up(N, 2048)
        if tile_m is None:
            tile_m = 2048
        if tile_k is None:
            if _fused_vmem_bytes(tile_m, n_pad, H, mvv_b, x_b, out_b) <= budget:
                tile_k = n_pad
            else:
                tile_k = n_pad
                while (tile_k > 2048 and
                       _ktiled_vmem_bytes(tile_m, tile_k, H, mvv_b, x_b,
                                          out_b) > budget):
                    tile_k //= 2
                while (tile_m > 512 and
                       _ktiled_vmem_bytes(tile_m, tile_k, H, mvv_b, x_b,
                                          out_b) > budget):
                    tile_m //= 2

    assert n_pad % tile_m == 0 and tile_m % 8 == 0
    assert n_pad % tile_k == 0
    assert tile_k == n_pad or tile_k % 128 == 0

    # ---- pad the node axis to the tile grid (sliced off below) -------------
    if n_pad != N:
        pad = n_pad - N
        mvv = jnp.pad(mvv, ((0, pad), (0, pad)))
        x = jnp.pad(x, ((0, pad), (0, 0)))

    wt = weight.T                            # trace-time transpose, tiny
    bias2d = bias.reshape(1, H).astype(jnp.float32)

    fused = tile_k == n_pad
    est = (_fused_vmem_bytes(tile_m, n_pad, H, mvv_b, x_b, out_b) if fused
           else _ktiled_vmem_bytes(tile_m, tile_k, H, mvv_b, x_b, out_b))
    vmem_limit = int(min(cap, max(est + (4 << 20), 32 * 2**20)))

    if fused:
        kernel = functools.partial(_gcn_fused_kernel,
                                   compute_dtype=compute_dtype)
        out = pl.pallas_call(
            kernel,
            out_shape=jax.ShapeDtypeStruct((n_pad, H), out_dtype),
            grid_spec=pltpu.PrefetchScalarGridSpec(
                num_scalar_prefetch=0,
                grid=(n_pad // tile_m,),
                in_specs=[
                    pl.BlockSpec((tile_m, n_pad), lambda i: (i, 0)),  # Mvv rows
                    pl.BlockSpec((n_pad, H), lambda i: (0, 0)),       # x
                    pl.BlockSpec((H, H), lambda i: (0, 0)),           # W.T
                    pl.BlockSpec((1, H), lambda i: (0, 0)),           # bias
                ],
                out_specs=pl.BlockSpec((tile_m, H), lambda i: (i, 0)),
            ),
            compiler_params=pltpu.CompilerParams(
                dimension_semantics=("parallel",),
                vmem_limit_bytes=vmem_limit,
            ),
        )(mvv, x, wt, bias2d)
    else:
        kernel = functools.partial(_gcn_ktiled_kernel,
                                   compute_dtype=compute_dtype)
        out = pl.pallas_call(
            kernel,
            out_shape=jax.ShapeDtypeStruct((n_pad, H), out_dtype),
            grid_spec=pltpu.PrefetchScalarGridSpec(
                num_scalar_prefetch=0,
                grid=(n_pad // tile_m, n_pad // tile_k),
                in_specs=[
                    pl.BlockSpec((tile_m, tile_k), lambda i, k: (i, k)),  # Mvv
                    pl.BlockSpec((tile_k, H), lambda i, k: (k, 0)),       # x
                    pl.BlockSpec((H, H), lambda i, k: (0, 0)),            # W.T
                    pl.BlockSpec((1, H), lambda i, k: (0, 0)),            # bias
                ],
                out_specs=pl.BlockSpec((tile_m, H), lambda i, k: (i, 0)),
                scratch_shapes=[pltpu.VMEM((tile_m, H), jnp.float32)],
            ),
            compiler_params=pltpu.CompilerParams(
                dimension_semantics=("parallel", "arbitrary"),
                vmem_limit_bytes=vmem_limit,
            ),
        )(mvv, x, wt, bias2d)

    return out if n_pad == N else out[:N]


# ---------------------------------------------------------------------------
# Demo / correctness check
# ---------------------------------------------------------------------------

if __name__ == "__main__":
    hidden_dim = 64   # matches nn.Linear(64, 64) default in the module
    n_nodes = 128

    key = jax.random.PRNGKey(0)
    k_mvv, k_x, k_w, k_b = jax.random.split(key, 4)

    mvv = jax.random.uniform(k_mvv, (n_nodes, n_nodes), dtype=jnp.float32)
    x = jax.random.normal(k_x, (n_nodes, hidden_dim), dtype=jnp.float32)

    # PyTorch nn.Linear default init: U(-1/sqrt(in), 1/sqrt(in)).
    bound = 1.0 / (hidden_dim ** 0.5)
    weight = jax.random.uniform(
        k_w, (hidden_dim, hidden_dim), minval=-bound, maxval=bound,
        dtype=jnp.float32)
    bias = jax.random.uniform(
        k_b, (hidden_dim,), minval=-bound, maxval=bound, dtype=jnp.float32)

    # --- fused path, default bf16 streaming ---------------------------------
    out = jax.block_until_ready(gcn_layer(mvv, x, weight, bias))
    assert out.shape == (n_nodes, hidden_dim)
    assert out.dtype == jnp.float32

    # Check 1: reference applying the same in-kernel bf16 casts (tight-ish).
    cd = jnp.bfloat16
    xw_ref = jnp.dot(x, weight.T, preferred_element_type=jnp.float32).astype(cd)
    ref_matched = jnp.maximum(
        jnp.dot(mvv.astype(cd), xw_ref, preferred_element_type=jnp.float32)
        + bias, 0.0)
    assert jnp.allclose(out, ref_matched, atol=5e-2, rtol=2e-2)

    # Check 2: full-f32 semantics of the PyTorch module (looser: Mvv / xW are
    # quantized to bf16 inside the kernel; error grows roughly with sqrt(N)).
    ref_f32 = jnp.maximum((mvv @ x) @ weight.T + bias, 0.0)
    assert jnp.allclose(out, ref_f32, atol=1e-1, rtol=2e-2)

    # --- fused path, full-f32 compute ----------------------------------------
    out_f32 = jax.block_until_ready(
        gcn_layer(mvv, x, weight, bias, compute_dtype=jnp.float32))
    assert jnp.allclose(out_f32, ref_f32, atol=1e-1, rtol=2e-2)

    # --- k-tiled fallback path (forced via tile_k override at N=256) ---------
    n2 = 256
    mvv2 = jax.random.uniform(jax.random.PRNGKey(1), (n2, n2),
                              dtype=jnp.float32)
    x2 = jax.random.normal(jax.random.PRNGKey(2), (n2, hidden_dim),
                           dtype=jnp.float32)
    out2_kt = jax.block_until_ready(
        gcn_layer(mvv2, x2, weight, bias, tile_k=128))        # k-tiled kernel
    out2_fu = jax.block_until_ready(
        gcn_layer(mvv2, x2, weight, bias))                    # fused kernel
    assert jnp.allclose(out2_kt, out2_fu, atol=1e-3, rtol=1e-3)

    print("KERNEL_OK")
</pallas_src>

<mosaic_0001>
module attributes {stable_mosaic.version = 11 : i64} {
  func.func @_gcn_fused_kernel(%arg0: i32, %arg1: memref<64x128xf32, #tpu.memory_space<vmem>>, %arg2: memref<128x64xf32, #tpu.memory_space<vmem>>, %arg3: memref<64x64xf32, #tpu.memory_space<vmem>>, %arg4: memref<1x64xf32, #tpu.memory_space<vmem>>, %arg5: memref<64x64xf32, #tpu.memory_space<vmem>>) attributes {dimension_semantics = [#tpu.dimension_semantics<parallel>], iteration_bounds = array<i64: 2>, scalar_prefetch = 0 : i64, scratch_operands = 0 : i64, tpu.core_type = #tpu.core_type<tc>, window_params = [{transform_indices = @transform_0, window_bounds = array<i64: 64, 128>}, {pipeline_mode = #tpu.pipeline_mode<synchronous>, transform_indices = @transform_1, window_bounds = array<i64: 128, 64>}, {pipeline_mode = #tpu.pipeline_mode<synchronous>, transform_indices = @transform_2, window_bounds = array<i64: 64, 64>}, {pipeline_mode = #tpu.pipeline_mode<synchronous>, transform_indices = @transform_3, window_bounds = array<i64: 1, 64>}, {transform_indices = @transform_4, window_bounds = array<i64: 64, 64>}]} {
    %c0 = arith.constant 0 : index
    %c0_0 = arith.constant 0 : index
    %0 = vector.load %arg2[%c0, %c0_0] : memref<128x64xf32, #tpu.memory_space<vmem>>, vector<128x64xf32>
    %c0_1 = arith.constant 0 : index
    %c0_2 = arith.constant 0 : index
    %1 = vector.load %arg3[%c0_1, %c0_2] : memref<64x64xf32, #tpu.memory_space<vmem>>, vector<64x64xf32>
    %cst = arith.constant dense<0.000000e+00> : vector<128x64xf32>
    %2 = tpu.matmul %0, %1, %cst {dimension_numbers = #tpu.dot_dimension_numbers<[1], [0], [0], [1], [0, 0, 1, 1], [], []>} : vector<128x64xf32>, vector<64x64xf32>, vector<128x64xf32> -> vector<128x64xf32>
    %3 = arith.truncf %2 : vector<128x64xf32> to vector<128x64xbf16>
    %c0_3 = arith.constant 0 : index
    %c0_4 = arith.constant 0 : index
    %4 = vector.load %arg1[%c0_3, %c0_4] : memref<64x128xf32, #tpu.memory_space<vmem>>, vector<64x128xf32>
    %5 = arith.truncf %4 : vector<64x128xf32> to vector<64x128xbf16>
    %cst_5 = arith.constant dense<0.000000e+00> : vector<64x64xf32>
    %6 = tpu.matmul %5, %3, %cst_5 {dimension_numbers = #tpu.dot_dimension_numbers<[1], [0], [0], [1], [0, 0, 1, 1], [], []>} : vector<64x128xbf16>, vector<128x64xbf16>, vector<64x64xf32> -> vector<64x64xf32>
    %c0_6 = arith.constant 0 : index
    %c0_7 = arith.constant 0 : index
    %7 = vector.load %arg4[%c0_6, %c0_7] : memref<1x64xf32, #tpu.memory_space<vmem>>, vector<1x64xf32>
    %8 = vector.broadcast %7 : vector<1x64xf32> to vector<64x64xf32>
    %9 = arith.addf %6, %8 : vector<64x64xf32>
    %cst_8 = arith.constant 0.000000e+00 : f32
    %10 = vector.broadcast %cst_8 : f32 to vector<64x64xf32>
    %11 = arith.maximumf %9, %10 : vector<64x64xf32>
    %c0_9 = arith.constant 0 : index
    %c0_10 = arith.constant 0 : index
    %12 = vector.load %arg5[%c0_9, %c0_10] : memref<64x64xf32, #tpu.memory_space<vmem>>, vector<64x64xf32>
    tpu.vector_store %arg5[%c0_9, %c0_10], %11 {strides = array<i32>} : memref<64x64xf32, #tpu.memory_space<vmem>>, vector<64x64xf32>,
    return
  }
  func.func @transform_0(%arg0: i32) -> (i32, i32) {
    %c0_i32 = arith.constant 0 : i32
    %c0_i32_0 = arith.constant 0 : i32
    return %arg0, %c0_i32 : i32, i32
  }
  func.func @transform_1(%arg0: i32) -> (i32, i32) {
    %c0_i32 = arith.constant 0 : i32
    %c0_i32_0 = arith.constant 0 : i32
    %c0_i32_1 = arith.constant 0 : i32
    return %c0_i32, %c0_i32_0 : i32, i32
  }
  func.func @transform_2(%arg0: i32) -> (i32, i32) {
    %c0_i32 = arith.constant 0 : i32
    %c0_i32_0 = arith.constant 0 : i32
    %c0_i32_1 = arith.constant 0 : i32
    return %c0_i32, %c0_i32_0 : i32, i32
  }
  func.func @transform_3(%arg0: i32) -> (i32, i32) {
    %c0_i32 = arith.constant 0 : i32
    %c0_i32_0 = arith.constant 0 : i32
    %c0_i32_1 = arith.constant 0 : i32
    return %c0_i32, %c0_i32_0 : i32, i32
  }
  func.func @transform_4(%arg0: i32) -> (i32, i32) {
    %c0_i32 = arith.constant 0 : i32
    %c0_i32_0 = arith.constant 0 : i32
    return %arg0, %c0_i32 : i32, i32
  }
}

</mosaic_0001>

<bundles_post_ra>
// kernel: tpu_custom_call.1
= control target key start
LH: loop header
LB: loop body
LE: loop exit
PB: predicated region body
PF: predicated region fallthrough
CT: control target
= control target key end

     0   :  { %s769_s15 = smov 0   ;;  %s904_s0 = inlined_call_operand.vmem [shape: f32[128,128], index: 0, kind: input, shape index: {}]   ;;  %s905_s1 = inlined_call_operand.vmem [shape: f32[128,64], index: 1, kind: input, shape index: {}]   ;;  %s906_s2 = inlined_call_operand.vmem [shape: f32[64,64], index: 2, kind: input, shape index: {}]   ;;  %s907_s3 = inlined_call_operand.vmem [shape: f32[1,64], index: 3, kind: input, shape index: {}]   ;;  %s908_s4 = inlined_call_operand.vmem [shape: f32[128,64], index: 4, kind: output, shape index: {}]  }
   0x1 LB: > { %s584_s16 = sadd.s32 4294967295, %s742_s15   ;;  %p588_p0 = scmp.ge.s32.totalorder %s742_s15, 1  ;;  %s742_s15 = sphi %s769_s15, %s14_s15  }
   0x2   : > { %p163_p1 = scmp.lt.s32.totalorder %s742_s15, 3 }
   0x4   : > { %p164_p2 = pnand %p588_p0, %p163_p1 }
   0x5   : > { %v218_v0 = vld [vmem:[%s906_s2] sm:$0xff] (!%p164_p2)  ;;  %v219_v1 = vld [vmem:[%s906_s2 + $0x8] sm:$0xff] (!%p164_p2)  ;;  %v220_v2 = vld [vmem:[%s906_s2 + $0x10] sm:$0xff] (!%p164_p2)  ;;  %vm226_vm0 = vcmask (!%p164_p2), 523264   ;;  %s589_s17 = sshll.u32 (!%p164_p2), %s584_s16, 3 }
   0x6   : > { %167 = sbr.rel (%p164_p2) target bundleno = 499 (0x1f3), region = 36  ;;  %v712_v3 = vpack.c.bf16 (!%p164_p2), %v219_v1, %v218_v0  ;;  %v221_v4 = vld [vmem:[%s906_s2 + $0x18] sm:$0xff] (!%p164_p2)  ;;  %v222_v6 = vld [vmem:[%s906_s2 + $0x20] sm:$0xff] (!%p164_p2)  ;;  %v223_v7 = vld [vmem:[%s906_s2 + $0x28] sm:$0xff] (!%p164_p2)  ;;  %p190_p3 = scmp.lt.s32.totalorder (!%p164_p2), %s589_s17, 15 }
   0x7   : > { %v716_v5 = vpack.c.bf16 (!%p164_p2), %v221_v4, %v220_v2  ;;  %v202_v8 = vld [vmem:[%s905_s1] sm:$0xff] (!%p164_p2)  ;;  %v720_v9 = vpack.c.bf16 (!%p164_p2), %v223_v7, %v222_v6  ;;  %v224_v10 = vld [vmem:[%s906_s2 + $0x30] sm:$0xff] (!%p164_p2)  ;;  %v225_v11 = vld [vmem:[%s906_s2 + $0x38] sm:$0xff] (!%p164_p2) }
   0x8   : > { %713 = vmatprep.subr.bf16.mxu0 (!%p164_p2), %v712_v3  ;;  %664 = vmatprep.mubr.msk.f32.mxu0 (!%p164_p2), %vm226_vm0, %v202_v8  ;;  %v724_v12 = vpack.c.bf16 (!%p164_p2), %v225_v11, %v224_v10  ;;  %v203_v13 = vld [vmem:[%s905_s1 + $0x8] sm:$0xff] (!%p164_p2)  ;;  %v204_v14 = vld [vmem:[%s905_s1 + $0x10] sm:$0xff] (!%p164_p2)  ;;  %v205_v15 = vld [vmem:[%s905_s1 + $0x18] sm:$0xff] (!%p164_p2) }
   0x9   : > { %715 = vmatpush3.bf16.msra.mxu0 (!%p164_p2), %v712_v3  ;;  %v206_v16 = vld [vmem:[%s905_s1 + $0x20] sm:$0xff] (!%p164_p2)  ;;  %v207_v17 = vld [vmem:[%s905_s1 + $0x28] sm:$0xff] (!%p164_p2)  ;;  %v208_v18 = vld [vmem:[%s905_s1 + $0x30] sm:$0xff] (!%p164_p2) }
   0xa   : > { %717 = vmatprep.subr.bf16.mxu0 (!%p164_p2), %v716_v5  ;;  %v209_v19 = vld [vmem:[%s905_s1 + $0x38] sm:$0xff] (!%p164_p2)  ;;  %v210_v20 = vld [vmem:[%s905_s1 + $0x40] sm:$0xff] (!%p164_p2)  ;;  %v211_v21 = vld [vmem:[%s905_s1 + $0x48] sm:$0xff] (!%p164_p2) }
   0xb   : > { %v212_v22 = vld [vmem:[%s905_s1 + $0x50] sm:$0xff] (!%p164_p2)  ;;  %v213_v23 = vld [vmem:[%s905_s1 + $0x58] sm:$0xff] (!%p164_p2)  ;;  %v214_v24 = vld [vmem:[%s905_s1 + $0x60] sm:$0xff] (!%p164_p2) }
   0xc   : > { %v215_v25 = vld [vmem:[%s905_s1 + $0x68] sm:$0xff] (!%p164_p2)  ;;  %v216_v26 = vld [vmem:[%s905_s1 + $0x70] sm:$0xff] (!%p164_p2)  ;;  %v217_v27 = vld [vmem:[%s905_s1 + $0x78] sm:$0xff] (!%p164_p2) }
   0xd   : > { %719 = vmatpush3.bf16.msra.mxu0 %v716_v5  ;;  %s910_s17 = smov (!%p190_p3, %s589_s17), 15  ;;  %v609_v0 = vld [vmem:[%s907_s3] ss:$0 sm:$0xff] }
   0xe   : > { %721 = vmatprep.subr.bf16.mxu0 %v720_v9  ;;  %s590_s18 = sshll.u32 %s910_s17, 3 }
   0xf   : > { %s875_s21 = scalar_lea.vmem %s904_s0, %s590_s18  ;;  %s199_s25 = scalar_lea.vmem %s908_s4, %s590_s18 }
  0x10   : > { %v428_v28 = vld [vmem:[%s875_s21] sm:$0xff]  ;;  %v429_v29 = vld [vmem:[%s875_s21 + $0x8] sm:$0xff]  ;;  %v430_v54 = vld [vmem:[%s875_s21 + $0x10] sm:$0xff] }
  0x11   : > { %723 = vmatpush3.bf16.msra.mxu0 %v720_v9  ;;  %v436_v30 = vpack.c.bf16 %v429_v29, %v428_v28  ;;  %v431_v55 = vld [vmem:[%s875_s21 + $0x18] sm:$0xff]  ;;  %v432_v57 = vld [vmem:[%s875_s21 + $0x20] sm:$0xff]  ;;  %v433_v58 = vld [vmem:[%s875_s21 + $0x28] sm:$0xff] }
  0x12   : > { %725 = vmatprep.subr.bf16.mxu0 %v724_v12  ;;  %v437_v59 = vpack.c.bf16 %v431_v55, %v430_v54  ;;  %v438_v60 = vpack.c.bf16 %v433_v58, %v432_v57  ;;  %v434_v61 = vld [vmem:[%s875_s21 + $0x30] sm:$0xff]  ;;  %v435_v62 = vld [vmem:[%s875_s21 + $0x38] sm:$0xff] }
  0x13   : > { %704 = vmatprep.mubr.bf16.mxu1 %v436_v30  ;;  %v439_v63 = vpack.c.bf16 %v435_v62, %v434_v61 }
  0x15   : > { %727 = vmatpush3.bf16.msra.mxu0 %v724_v12 }
  0x18   : > { %665 = vmatmul.mubr.msk.f32.vlgmr.msra.gmra.mrb[0].mxu0 %vm226_vm0, %v203_v13 }
  0x19   : > { %667 = vmatprep.mubr.msk.f32.mxu0 %vm226_vm0, %v204_v14 }
  0x1c   : > { %668 = vmatmul.mubr.msk.f32.gmra.mrb[2].mxu0 %vm226_vm0, %v205_v15 }
  0x1d   : > { %670 = vmatprep.mubr.msk.f32.mxu0 %vm226_vm0, %v206_v16 }
  0x20   : > { %671 = vmatmul.mubr.msk.f32.gmra.mrb[4].mxu0 %vm226_vm0, %v207_v17 }
  0x21   : > { %673 = vmatprep.mubr.msk.f32.mxu0 %vm226_vm0, %v208_v18 }
  0x24   : > { %674 = vmatmul.mubr.msk.f32.gmra.mrb[6].mxu0 %vm226_vm0, %v209_v19 }
  0x25   : > { %676 = vmatprep.mubr.msk.f32.mxu0 %vm226_vm0, %v210_v20 }
  0x28   : > { %677 = vmatmul.mubr.msk.f32.gmra.mrb[8].mxu0 %vm226_vm0, %v211_v21 }
  0x29   : > { %679 = vmatprep.mubr.msk.f32.mxu0 %vm226_vm0, %v212_v22 }
  0x2c   : > { %680 = vmatmul.mubr.msk.f32.gmra.mrb[10].mxu0 %vm226_vm0, %v213_v23 }
  0x2d   : > { %682 = vmatprep.mubr.msk.f32.mxu0 %vm226_vm0, %v214_v24 }
  0x30   : > { %683 = vmatmul.mubr.msk.f32.gmra.mrb[12].mxu0 %vm226_vm0, %v215_v25 }
  0x31   : > { %685 = vmatprep.mubr.msk.f32.mxu0 %vm226_vm0, %v216_v26 }
  0x34   : > { %686 = vmatmul.mubr.msk.f32.gmra.mrb[14].mxu0 %vm226_vm0, %v217_v27 }
  0xeb   : > { %v666_v31 = vpop.f32.mrb[0].mxu0 }
  0xec   : > { %v341_v32 = vpop.f32.mrb[1].mxu0 }
  0xed   : > { %v420_v33 = vpack.c.bf16 %v666_v31, %v341_v32 }
  0xef   : > { %v669_v34 = vpop.f32.mrb[2].mxu0  ;;  %688 = vmatprep.subr.bf16.mxu1 %v420_v33 }
  0xf0   : > { %v351_v35 = vpop.f32.mrb[3].mxu0  ;;  %689 = vmatpush3.bf16.msra.mxu1 %v420_v33 }
  0xf1   : > { %v421_v36 = vpack.c.bf16 %v669_v34, %v351_v35 }
  0xf3   : > { %v672_v37 = vpop.f32.mrb[4].mxu0  ;;  %690 = vmatprep.subr.bf16.mxu1 %v421_v36 }
  0xf4   : > { %v361_v38 = vpop.f32.mrb[5].mxu0  ;;  %691 = vmatpush3.bf16.msra.mxu1 %v421_v36 }
  0xf5   : > { %v422_v39 = vpack.c.bf16 %v672_v37, %v361_v38 }
  0xf7   : > { %v675_v40 = vpop.f32.mrb[6].mxu0  ;;  %692 = vmatprep.subr.bf16.mxu1 %v422_v39 }
  0xf8   : > { %v371_v41 = vpop.f32.mrb[7].mxu0  ;;  %693 = vmatpush3.bf16.msra.mxu1 %v422_v39 }
  0xf9   : > { %v423_v42 = vpack.c.bf16 %v675_v40, %v371_v41 }
  0xfb   : > { %v678_v43 = vpop.f32.mrb[8].mxu0  ;;  %694 = vmatprep.subr.bf16.mxu1 %v423_v42 }
  0xfc   : > { %v381_v44 = vpop.f32.mrb[9].mxu0  ;;  %695 = vmatpush3.bf16.msra.mxu1 %v423_v42 }
  0xfd   : > { %v424_v45 = vpack.c.bf16 %v678_v43, %v381_v44 }
  0xff   : > { %v681_v46 = vpop.f32.mrb[10].mxu0  ;;  %696 = vmatprep.subr.bf16.mxu1 %v424_v45 }
 0x100   : > { %v391_v47 = vpop.f32.mrb[11].mxu0  ;;  %697 = vmatpush3.bf16.msra.mxu1 %v424_v45 }
 0x101   : > { %v425_v48 = vpack.c.bf16 %v681_v46, %v391_v47 }
 0x103   : > { %v684_v49 = vpop.f32.mrb[12].mxu0  ;;  %698 = vmatprep.subr.bf16.mxu1 %v425_v48 }
 0x104   : > { %v401_v50 = vpop.f32.mrb[13].mxu0  ;;  %699 = vmatpush3.bf16.msra.mxu1 %v425_v48 }
 0x105   : > { %v426_v51 = vpack.c.bf16 %v684_v49, %v401_v50 }
 0x107   : > { %v687_v52 = vpop.f32.mrb[14].mxu0  ;;  %700 = vmatprep.subr.bf16.mxu1 %v426_v51 }
 0x108   : > { %v411_v53 = vpop.f32.mrb[15].mxu0  ;;  %701 = vmatpush3.bf16.msra.mxu1 %v426_v51 }
 0x109   : > { %v427_v56 = vpack.c.bf16 %v687_v52, %v411_v53 }
 0x10b   : > { %702 = vmatprep.subr.bf16.mxu1 %v427_v56 }
 0x10c   : > { %703 = vmatpush3.bf16.msra.mxu1 %v427_v56 }
 0x10f   : > { %705 = vmatmul.mubr.bf16.vlgmr.msra.gmra.mrb[0].mxu1 %v437_v59 }
 0x110   : > { %708 = vmatprep.mubr.bf16.mxu1 %v438_v60 }
 0x117   : > { %709 = vmatmul.mubr.bf16.gmra.mrb[4].mxu1 %v439_v63 }
 0x1e2   : > { %v706_v1 = vpop.f32.mrb[0].mxu1 }
 0x1e3   : > { %v490_v2 = vadd.f32 %v706_v1, %v609_v0  ;;  %v481_v3 = vpop.f32.mrb[1].mxu1 }
 0x1e4   : > { %v482_v4 = vadd.f32 %v609_v0, %v481_v3  ;;  %v707_v5 = vpop.f32.mrb[2].mxu1 }
 0x1e5   : > { %v514_v6 = vmax.f32 %v490_v2, 0.0  ;;  %v493_v7 = vadd.f32 %v707_v5, %v609_v0  ;;  %v484_v8 = vpop.f32.mrb[3].mxu1 }
 0x1e6   : > { %v512_v9 = vmax.f32 %v482_v4, 0.0  ;;  %v485_v10 = vadd.f32 %v609_v0, %v484_v8 }
 0x1e7   : > { %522 = vst.msk [vmem:[%s199_s25 + $0x10] sm:$0xff] %vm226_vm0, %v514_v6  ;;  %v515_v11 = vmax.f32 %v493_v7, 0.0 }
 0x1e8   : > { %520 = vst.msk [vmem:[%s199_s25] sm:$0xff] %vm226_vm0, %v512_v9  ;;  %v513_v12 = vmax.f32 %v485_v10, 0.0 }
 0x1e9   : > { %523 = vst.msk [vmem:[%s199_s25 + $0x18] sm:$0xff] %vm226_vm0, %v515_v11 }
 0x1ea   : > { %521 = vst.msk [vmem:[%s199_s25 + $0x8] sm:$0xff] %vm226_vm0, %v513_v12  ;;  %v710_v13 = vpop.f32.mrb[4].mxu1 }
 0x1eb   : > { %v506_v14 = vadd.f32 %v710_v13, %v609_v0  ;;  %v497_v15 = vpop.f32.mrb[5].mxu1 }
 0x1ec   : > { %v498_v16 = vadd.f32 %v609_v0, %v497_v15  ;;  %v711_v17 = vpop.f32.mrb[6].mxu1 }
 0x1ed   : > { %v518_v18 = vmax.f32 %v506_v14, 0.0  ;;  %v509_v19 = vadd.f32 %v711_v17, %v609_v0  ;;  %v500_v20 = vpop.f32.mrb[7].mxu1 }
 0x1ee   : > { %v516_v21 = vmax.f32 %v498_v16, 0.0  ;;  %v501_v22 = vadd.f32 %v609_v0, %v500_v20 }
 0x1ef   : > { %526 = vst.msk [vmem:[%s199_s25 + $0x30] sm:$0xff] %vm226_vm0, %v518_v18  ;;  %v519_v23 = vmax.f32 %v509_v19, 0.0 }
 0x1f0   : > { %524 = vst.msk [vmem:[%s199_s25 + $0x20] sm:$0xff] %vm226_vm0, %v516_v21  ;;  %v517_v24 = vmax.f32 %v501_v22, 0.0 }
 0x1f1   : > { %527 = vst.msk [vmem:[%s199_s25 + $0x38] sm:$0xff] %vm226_vm0, %v519_v23 }
 0x1f2   : > { %525 = vst.msk [vmem:[%s199_s25 + $0x28] sm:$0xff] %vm226_vm0, %v517_v24 }
 0x1f3 PF: > { %s14_s15 = sadd.s32 1, %s742_s15  }
 0x1f4   : > { %p11_p4 = scmp.ge.s32.totalorder %s14_s15, 4  }
 0x1f6   :  { %13 = sbr.rel (!%p11_p4) target bundleno = 1 (0x1), region = 66 }

</bundles_post_ra>
